<compile_context>
chip_gen: v6e
topology: v6e:2x2x1
jax: 0.10.0
libtpu: 0.0.40
codegen_flags: <defaults>
</compile_context>

<pallas_src>
import functools

import jax
import jax.numpy as jnp
import numpy as np
from jax.experimental import pallas as pl
from jax.experimental.pallas import tpu as pltpu


# ----------------------------------------------------------------------------- kernel ---
def msr_kernel(srate_ref, x_ref, wqk_ref, wvg_ref, wo_ref, cos_ref, sin_ref,
               gamma_ref, out_ref, state_ref, *, head_qk_dim, head_v_dim,
               chunk_size, eps):
    c = pl.program_id(1)          # time-chunk index (sequential: carries the state)
    h = pl.program_id(2)          # head index (innermost: accumulates into the output)

    d, dv, C = head_qk_dim, head_v_dim, chunk_size

    # Reset this head's recurrent state at the first chunk of each batch row.
    @pl.when(c == 0)
    def _init_state():
        state_ref[h] = jnp.zeros((d, dv), jnp.float32)

    x = x_ref[0]                                                   # (C, H) bf16

    # Fused per-head projections (bf16 operands, f32 MXU accumulation).
    #   wqk = [Wq*scale | (Wq@rot)*scale | Wk | Wk@rot]   -> (C, 4*d)
    #   wvg = [Wv | Wg]                                   -> (C, 2*dv)
    qk = jnp.dot(x, wqk_ref[0], preferred_element_type=jnp.float32)
    vg = jnp.dot(x, wvg_ref[0], preferred_element_type=jnp.float32)

    cos = cos_ref[...]                                             # (C, d)
    sin = sin_ref[...]
    q = qk[:, 0 * d:1 * d] * cos + qk[:, 1 * d:2 * d] * sin        # rotary (rot folded in W)
    k = qk[:, 2 * d:3 * d] * cos + qk[:, 3 * d:4 * d] * sin
    v = vg[:, :dv]
    g = vg[:, dv:]

    # Per-chunk decay factors from the per-head ln(gamma) rate (SMEM scalar):
    # only O(chunk) transcendentals per step.
    s_h = srate_ref[h]                                             # ln(gamma_h) < 0
    pos = jax.lax.broadcasted_iota(jnp.int32, (C, 1), 0).astype(jnp.float32)
    colf = jax.lax.broadcasted_iota(jnp.int32, (1, C), 1).astype(jnp.float32)
    q_decay = jnp.exp(pos * s_h)                                   # gamma^i       (C, 1)
    k_decay = jnp.exp((C - pos) * s_h)                             # gamma^(C-i)   (C, 1)
    inv_col = jnp.exp(-colf * s_h)                                 # gamma^(-j)    (1, C)
    row_i = jax.lax.broadcasted_iota(jnp.int32, (C, 1), 0)
    col_j = jax.lax.broadcasted_iota(jnp.int32, (1, C), 1)

    q_bf = q.astype(jnp.bfloat16)
    k_bf = k.astype(jnp.bfloat16)
    v_bf = v.astype(jnp.bfloat16)

    # Intra-chunk retention; causal decay folded in as row/col scalings.
    scores = jax.lax.dot_general(
        q_bf, k_bf, dimension_numbers=(((1,), (1,)), ((), ())),
        preferred_element_type=jnp.float32)                        # (C, C)
    scores = jnp.where(row_i >= col_j, scores * q_decay * inv_col, 0.0)
    o = jnp.dot(scores.astype(jnp.bfloat16), v_bf,
                preferred_element_type=jnp.float32)                # (C, dv)

    # Cross-chunk contribution from the carried recurrent state.
    state = state_ref[h]                                           # (d, dv) f32
    o = o + jnp.dot((q * q_decay).astype(jnp.bfloat16),
                    state.astype(jnp.bfloat16),
                    preferred_element_type=jnp.float32)

    # State update: S' = gamma^C * S + (gamma^(C-i) * k_i)^T v_i.
    kv = jax.lax.dot_general(
        (k * k_decay).astype(jnp.bfloat16), v_bf,
        dimension_numbers=(((0,), (0,)), ((), ())),
        preferred_element_type=jnp.float32)                        # (d, dv)
    state_ref[h] = state * k_decay[0:1] + kv                       # k_decay[0] == gamma^C

    # RMSNorm over head_v_dim (f32), then swish output gate.
    ms = jnp.mean(o * o, axis=-1, keepdims=True)
    o = o * jax.lax.rsqrt(ms + eps) * gamma_ref[...]
    o = o * (g * jax.nn.sigmoid(g))

    # Per-head rows of the output projection, accumulated into the resident
    # (1, C, H) output block (no extra (T, H) scratch).
    head_out = jnp.dot(o.astype(jnp.bfloat16), wo_ref[0],
                       preferred_element_type=jnp.float32)         # (C, H)

    @pl.when(h == 0)
    def _first_head():
        out_ref[0] = head_out

    @pl.when(h > 0)
    def _other_heads():
        out_ref[0] += head_out


# ---------------------------------------------------------------------------- wrapper ---
def multi_scale_retention(x, params, *, num_heads, chunk_size=None, eps=1e-5):
    B, T, H = x.shape
    nh = num_heads
    d = H // nh
    dv = 2 * H // nh

    if chunk_size is None:
        chunk_size = min(T, 128)
    C = chunk_size
    assert T % C == 0, "seq_len must be a multiple of chunk_size"
    n_chunks = T // C

    s_rates, wqk, wvg, wo, cos, sin, gamma = params
    x_bf = x.astype(jnp.bfloat16)                                  # bf16 once, in the wrapper

    kernel = functools.partial(msr_kernel, head_qk_dim=d, head_v_dim=dv,
                               chunk_size=C, eps=eps)

    # VMEM budget from actual residency: double-buffered in/out blocks,
    # recurrent-state scratch and f32 intermediates, clamped to [32, 96] MiB.
    block_bytes = 2 * (C * H * 2 + H * 4 * d * 2 + H * 2 * dv * 2 + dv * H * 2
                       + 2 * C * d * 4 + dv * 4 + C * H * 4)
    work_bytes = 4 * (C * 4 * d + C * 2 * dv + 3 * C * C + 4 * C * dv + 2 * C * H)
    scratch_bytes = nh * d * dv * 4
    vmem_limit = int(min(max(2 * (block_bytes + work_bytes + scratch_bytes),
                             32 * 1024 * 1024), 96 * 1024 * 1024))

    flops = B * n_chunks * nh * (2 * C * H * (4 * d + 2 * dv)      # projections
                                 + 2 * C * C * (d + dv)            # intra-chunk retention
                                 + 4 * C * d * dv                  # cross term + state update
                                 + 2 * C * dv * H)                 # output projection
    transcendentals = B * n_chunks * nh * (3 * C + C * dv + C)     # decays + sigmoid + rsqrt
    bytes_accessed = (B * n_chunks * nh * (C * H * 2
                                           + (H * 4 * d + H * 2 * dv + dv * H) * 2
                                           + 2 * C * d * 4)
                      + B * T * H * 4)

    return pl.pallas_call(
        kernel,
        out_shape=jax.ShapeDtypeStruct((B, T, H), jnp.float32),
        grid=(B, n_chunks, nh),
        in_specs=[
            pl.BlockSpec(memory_space=pltpu.MemorySpace.SMEM),          # per-head ln decay rates
            pl.BlockSpec((1, C, H), lambda b, c, h: (b, c, 0)),         # x (bf16)
            pl.BlockSpec((1, H, 4 * d), lambda b, c, h: (h, 0, 0)),     # [Wq|Wq_rot|Wk|Wk_rot]
            pl.BlockSpec((1, H, 2 * dv), lambda b, c, h: (h, 0, 0)),    # [Wv|Wg]
            pl.BlockSpec((1, dv, H), lambda b, c, h: (h, 0, 0)),        # Wo rows (per head)
            pl.BlockSpec((C, d), lambda b, c, h: (c, 0)),               # cos
            pl.BlockSpec((C, d), lambda b, c, h: (c, 0)),               # sin
            pl.BlockSpec((1, dv), lambda b, c, h: (0, 0)),              # RMSNorm weight
        ],
        out_specs=pl.BlockSpec((1, C, H), lambda b, c, h: (b, c, 0)),
        scratch_shapes=[pltpu.VMEM((nh, d, dv), jnp.float32)],          # recurrent state per head
        compiler_params=pltpu.CompilerParams(
            dimension_semantics=("parallel", "arbitrary", "arbitrary"),
            vmem_limit_bytes=vmem_limit),
        cost_estimate=pl.CostEstimate(flops=flops,
                                      transcendentals=transcendentals,
                                      bytes_accessed=bytes_accessed),
    )(s_rates, x_bf, wqk, wvg, wo, cos, sin, gamma)


# ------------------------------------------------------------------- parameter helpers --
def xavier_uniform(key, shape_in_out, gain):
    fan_in, fan_out = shape_in_out
    bound = gain * np.sqrt(6.0 / (fan_in + fan_out))
    return jax.random.uniform(key, shape_in_out, jnp.float32, -bound, bound)


def rotary_tables(T, d, base=10000.0):
    theta = 1.0 / (base ** (np.arange(0, d, 2, dtype=np.float32) / d))
    ang = np.outer(np.arange(T, dtype=np.float32), theta)            # (T, d/2)
    cos = np.repeat(np.cos(ang), 2, axis=-1).astype(np.float32)      # (T, d) interleaved
    sin = np.repeat(np.sin(ang), 2, axis=-1).astype(np.float32)
    rot = np.zeros((d, d), np.float32)                               # x @ rot == rotate_pairs(x)
    for i in range(d // 2):
        rot[2 * i + 1, 2 * i] = -1.0                                 # out[2i]   = -x[2i+1]
        rot[2 * i, 2 * i + 1] = 1.0                                  # out[2i+1] =  x[2i]
    return jnp.asarray(cos), jnp.asarray(sin), jnp.asarray(rot)


def decay_mask(num_heads, T):
    h = np.arange(num_heads, dtype=np.float64)
    s = np.log2(1.0 - 2.0 ** (-5.0 - h))                             # (nh,)
    n = np.arange(T, dtype=np.float64)
    diff = n[:, None] - n[None, :]
    D = np.exp2(diff[None] * s[:, None, None]) * (n[:, None] >= n[None, :]).astype(np.float64)
    return jnp.asarray(D.astype(np.float32))


def make_params(key, hidden_size, num_heads, seq_len):
    H = hidden_size
    nh = num_heads
    d = H // nh
    dv = 2 * H // nh
    gain = 2.0 ** (-2.5)

    kq, kk, kv, kg, ko = jax.random.split(key, 5)
    # stored as (in_features, out_features) so forward is x @ W
    Wq = xavier_uniform(kq, (H, H), gain)
    Wk = xavier_uniform(kk, (H, H), gain)
    Wv = xavier_uniform(kv, (H, 2 * H), gain)
    Wg = xavier_uniform(kg, (H, 2 * H), gain)
    Wo = xavier_uniform(ko, (2 * H, H), gain)

    cos, sin, rot = rotary_tables(seq_len, d)

    # ---- fused / pre-folded kernel weights (bf16 for MXU operands) ----
    # NOTE: for real RetNet sizes (d=128, dv=256) every fused section is a
    # multiple of 128 lanes, so in-kernel slices are whole-vreg slabs.
    scale = d ** -0.5
    Wq_h = Wq.reshape(H, nh, d).transpose(1, 0, 2)                   # (nh, H, d)
    Wk_h = Wk.reshape(H, nh, d).transpose(1, 0, 2)
    Wq_r = jnp.einsum('hif,fo->hio', Wq_h, rot)                      # rotary pair-rotation folded in
    Wk_r = jnp.einsum('hif,fo->hio', Wk_h, rot)
    Wqk = jnp.concatenate([Wq_h * scale, Wq_r * scale, Wk_h, Wk_r],
                          axis=-1).astype(jnp.bfloat16)              # (nh, H, 4d)

    Wv_h = Wv.reshape(H, nh, dv).transpose(1, 0, 2)
    Wg_h = Wg.reshape(H, nh, dv).transpose(1, 0, 2)
    Wvg = jnp.concatenate([Wv_h, Wg_h], axis=-1).astype(jnp.bfloat16)  # (nh, H, 2dv)

    Wo_h = Wo.reshape(nh, dv, H).astype(jnp.bfloat16)                # (nh, dv, H)

    # per-head natural-log decay rates (kernel uses jnp.exp)
    s_rates = jnp.asarray(
        np.log(1.0 - 2.0 ** (-5.0 - np.arange(nh, dtype=np.float64))).astype(np.float32))
    gamma = jnp.ones((1, dv), jnp.float32)                           # RMSNorm weight

    kernel_params = (s_rates, Wqk, Wvg, Wo_h, cos, sin, gamma)

    D = decay_mask(nh, seq_len)
    full_params = (Wq, Wk, Wv, Wg, Wo, cos, sin, rot, D, gamma)
    return kernel_params, full_params


# ------------------------------------------------------------------------- reference ----
def reference_forward(x, full_params, num_heads, eps=1e-5):
    Wq, Wk, Wv, Wg, Wo, cos, sin, rot, D, gamma = full_params
    B, T, H = x.shape
    d_qk = H // num_heads
    d_v = 2 * H // num_heads
    q = x @ Wq
    k = x @ Wk
    v = x @ Wv
    g = x @ Wg
    q = q.reshape(B, T, num_heads, d_qk)
    k = k.reshape(B, T, num_heads, d_qk)
    q = q * cos[None, :, None, :] + (q @ rot) * sin[None, :, None, :]
    k = k * cos[None, :, None, :] + (k @ rot) * sin[None, :, None, :]
    q = q.transpose(0, 2, 1, 3)
    k = k.transpose(0, 2, 1, 3)
    v = v.reshape(B, T, num_heads, d_v).transpose(0, 2, 1, 3)
    s = jnp.einsum('bhqd,bhkd->bhqk', q * d_qk ** -0.5, k) * D[None]
    o = jnp.einsum('bhqk,bhkd->bhqd', s, v)
    o = o.transpose(0, 2, 1, 3)                                      # (B, T, nh, d_v)
    o = o * jax.lax.rsqrt(jnp.mean(o * o, axis=-1, keepdims=True) + eps) * gamma[0]
    o = o.reshape(B, T, 2 * H)
    o = o * (g * jax.nn.sigmoid(g))
    return o @ Wo


# ------------------------------------------------------------------------------ main ----
if __name__ == "__main__":
    # Small deterministic shapes: 2 chunks so the cross-chunk recurrence path
    # (carried (d_qk, d_v) state) is actually exercised.
    B, T, H, NH = 2, 16, 32, 4      # batch, seq, hidden, heads  (d_qk=8, d_v=16)
    CHUNK = 8
    key = jax.random.PRNGKey(0)
    kx, kp = jax.random.split(key)
    x = jax.random.normal(kx, (B, T, H), jnp.float32)

    kernel_params, full_params = make_params(kp, H, NH, T)

    out = multi_scale_retention(x, kernel_params, num_heads=NH, chunk_size=CHUNK, eps=1e-5)
    out = jax.block_until_ready(out)

    ref = reference_forward(x, full_params, NH, eps=1e-5)
    # bf16 matmul operands (f32 accumulation) -> looser tolerance than pure-f32.
    np.testing.assert_allclose(np.asarray(out), np.asarray(ref), rtol=3e-2, atol=3e-3)

    print("KERNEL_OK")
</pallas_src>

<mosaic_0001>
module attributes {stable_mosaic.version = 11 : i64} {
  func.func @msr_kernel(%arg0: i32, %arg1: i32, %arg2: i32, %arg3: memref<4xf32, #tpu.memory_space<smem>>, %arg4: memref<1x8x32xbf16, #tpu.memory_space<vmem>>, %arg5: memref<1x32x32xbf16, #tpu.memory_space<vmem>>, %arg6: memref<1x32x32xbf16, #tpu.memory_space<vmem>>, %arg7: memref<1x16x32xbf16, #tpu.memory_space<vmem>>, %arg8: memref<8x8xf32, #tpu.memory_space<vmem>>, %arg9: memref<8x8xf32, #tpu.memory_space<vmem>>, %arg10: memref<1x16xf32, #tpu.memory_space<vmem>>, %arg11: memref<1x8x32xf32, #tpu.memory_space<vmem>>, %arg12: memref<4x8x16xf32, #tpu.memory_space<vmem>>) attributes {dimension_semantics = [#tpu.dimension_semantics<parallel>, #tpu.dimension_semantics<arbitrary>, #tpu.dimension_semantics<arbitrary>], iteration_bounds = array<i64: 2, 2, 4>, scalar_prefetch = 0 : i64, scratch_operands = 1 : i64, tpu.core_type = #tpu.core_type<tc>, window_params = [{transform_indices = @transform_0, window_bounds = array<i64: 4>}, {transform_indices = @transform_1, window_bounds = array<i64: 1, 8, 32>}, {transform_indices = @transform_2, window_bounds = array<i64: 1, 32, 32>}, {transform_indices = @transform_3, window_bounds = array<i64: 1, 32, 32>}, {transform_indices = @transform_4, window_bounds = array<i64: 1, 16, 32>}, {transform_indices = @transform_5, window_bounds = array<i64: 8, 8>}, {transform_indices = @transform_6, window_bounds = array<i64: 8, 8>}, {pipeline_mode = #tpu.pipeline_mode<synchronous>, transform_indices = @transform_7, window_bounds = array<i64: 1, 16>}, {transform_indices = @transform_8, window_bounds = array<i64: 1, 8, 32>}]} {
    %c0_i32 = arith.constant 0 : i32
    %0 = arith.cmpi eq, %arg1, %c0_i32 : i32
    %1 = arith.extui %0 : i1 to i32
    %c0_i32_0 = arith.constant 0 : i32
    %2 = arith.cmpi ne, %1, %c0_i32_0 : i32
    scf.if %2 {
      %cst_39 = arith.constant 0.000000e+00 : f32
      %112 = vector.broadcast %cst_39 : f32 to vector<8x16xf32>
      %113 = arith.index_cast %arg2 : i32 to index
      %c0_40 = arith.constant 0 : index
      %c0_41 = arith.constant 0 : index
      %114 = vector.load %arg12[%113, %c0_40, %c0_41] : memref<4x8x16xf32, #tpu.memory_space<vmem>>, vector<1x8x16xf32>
      %115 = vector.shape_cast %114 : vector<1x8x16xf32> to vector<8x16xf32>
      %116 = vector.shape_cast %112 : vector<8x16xf32> to vector<1x8x16xf32>
      tpu.vector_store %arg12[%113, %c0_40, %c0_41], %116 {strides = array<i32>} : memref<4x8x16xf32, #tpu.memory_space<vmem>>, vector<1x8x16xf32>,
    } else {
    }
    %c0 = arith.constant 0 : index
    %c0_1 = arith.constant 0 : index
    %c0_2 = arith.constant 0 : index
    %3 = vector.load %arg4[%c0, %c0_1, %c0_2] : memref<1x8x32xbf16, #tpu.memory_space<vmem>>, vector<1x8x32xbf16>
    %4 = vector.shape_cast %3 : vector<1x8x32xbf16> to vector<8x32xbf16>
    %c0_3 = arith.constant 0 : index
    %c0_4 = arith.constant 0 : index
    %c0_5 = arith.constant 0 : index
    %5 = vector.load %arg5[%c0_3, %c0_4, %c0_5] : memref<1x32x32xbf16, #tpu.memory_space<vmem>>, vector<1x32x32xbf16>
    %6 = vector.shape_cast %5 : vector<1x32x32xbf16> to vector<32x32xbf16>
    %cst = arith.constant dense<0.000000e+00> : vector<8x32xf32>
    %7 = tpu.matmul %4, %6, %cst {dimension_numbers = #tpu.dot_dimension_numbers<[1], [0], [0], [1], [0, 0, 1, 1], [], []>} : vector<8x32xbf16>, vector<32x32xbf16>, vector<8x32xf32> -> vector<8x32xf32>
    %c0_6 = arith.constant 0 : index
    %c0_7 = arith.constant 0 : index
    %c0_8 = arith.constant 0 : index
    %8 = vector.load %arg6[%c0_6, %c0_7, %c0_8] : memref<1x32x32xbf16, #tpu.memory_space<vmem>>, vector<1x32x32xbf16>
    %9 = vector.shape_cast %8 : vector<1x32x32xbf16> to vector<32x32xbf16>
    %cst_9 = arith.constant dense<0.000000e+00> : vector<8x32xf32>
    %10 = tpu.matmul %4, %9, %cst_9 {dimension_numbers = #tpu.dot_dimension_numbers<[1], [0], [0], [1], [0, 0, 1, 1], [], []>} : vector<8x32xbf16>, vector<32x32xbf16>, vector<8x32xf32> -> vector<8x32xf32>
    %c0_10 = arith.constant 0 : index
    %c0_11 = arith.constant 0 : index
    %11 = vector.load %arg8[%c0_10, %c0_11] : memref<8x8xf32, #tpu.memory_space<vmem>>, vector<8x8xf32>
    %c0_12 = arith.constant 0 : index
    %c0_13 = arith.constant 0 : index
    %12 = vector.load %arg9[%c0_12, %c0_13] : memref<8x8xf32, #tpu.memory_space<vmem>>, vector<8x8xf32>
    %13 = vector.extract_strided_slice %7 {offsets = [0, 0], sizes = [8, 8], strides = [1, 1]} : vector<8x32xf32> to vector<8x8xf32>
    %14 = arith.mulf %13, %11 : vector<8x8xf32>
    %15 = vector.extract_strided_slice %7 {offsets = [0, 8], sizes = [8, 8], strides = [1, 1]} : vector<8x32xf32> to vector<8x8xf32>
    %16 = arith.mulf %15, %12 : vector<8x8xf32>
    %17 = arith.addf %14, %16 : vector<8x8xf32>
    %18 = vector.extract_strided_slice %7 {offsets = [0, 16], sizes = [8, 8], strides = [1, 1]} : vector<8x32xf32> to vector<8x8xf32>
    %19 = arith.mulf %18, %11 : vector<8x8xf32>
    %20 = vector.extract_strided_slice %7 {offsets = [0, 24], sizes = [8, 8], strides = [1, 1]} : vector<8x32xf32> to vector<8x8xf32>
    %21 = arith.mulf %20, %12 : vector<8x8xf32>
    %22 = arith.addf %19, %21 : vector<8x8xf32>
    %23 = vector.extract_strided_slice %10 {offsets = [0, 0], sizes = [8, 16], strides = [1, 1]} : vector<8x32xf32> to vector<8x16xf32>
    %24 = vector.extract_strided_slice %10 {offsets = [0, 16], sizes = [8, 16], strides = [1, 1]} : vector<8x32xf32> to vector<8x16xf32>
    %25 = arith.index_cast %arg2 : i32 to index
    %26 = memref.load %arg3[%25] : memref<4xf32, #tpu.memory_space<smem>>
    %27 = tpu.iota {dimensions = array<i32: 0>} : vector<8x1xi32>
    %28 = arith.sitofp %27 : vector<8x1xi32> to vector<8x1xf32>
    %29 = tpu.iota {dimensions = array<i32: 1>} : vector<1x8xi32>
    %30 = arith.sitofp %29 : vector<1x8xi32> to vector<1x8xf32>
    %31 = vector.broadcast %26 : f32 to vector<8x1xf32>
    %32 = arith.mulf %28, %31 : vector<8x1xf32>
    %33 = math.exp %32 : vector<8x1xf32>
    %cst_14 = arith.constant 8.000000e+00 : f32
    %34 = vector.broadcast %cst_14 : f32 to vector<8x1xf32>
    %35 = arith.subf %34, %28 : vector<8x1xf32>
    %36 = vector.broadcast %26 : f32 to vector<8x1xf32>
    %37 = arith.mulf %35, %36 : vector<8x1xf32>
    %38 = math.exp %37 : vector<8x1xf32>
    %cst_15 = arith.constant 0.000000e+00 : f32
    %39 = vector.broadcast %cst_15 : f32 to vector<1x8xf32>
    %40 = arith.subf %39, %30 : vector<1x8xf32>
    %41 = vector.broadcast %26 : f32 to vector<1x8xf32>
    %42 = arith.mulf %40, %41 : vector<1x8xf32>
    %43 = math.exp %42 : vector<1x8xf32>
    %44 = tpu.iota {dimensions = array<i32: 0>} : vector<8x1xi32>
    %45 = tpu.iota {dimensions = array<i32: 1>} : vector<1x8xi32>
    %46 = arith.truncf %17 : vector<8x8xf32> to vector<8x8xbf16>
    %47 = arith.truncf %22 : vector<8x8xf32> to vector<8x8xbf16>
    %48 = arith.truncf %23 : vector<8x16xf32> to vector<8x16xbf16>
    %cst_16 = arith.constant dense<0.000000e+00> : vector<8x8xf32>
    %49 = tpu.matmul %46, %47, %cst_16 {dimension_numbers = #tpu.dot_dimension_numbers<[1], [1], [0], [0], [0, 0, 1, 0], [], []>} : vector<8x8xbf16>, vector<8x8xbf16>, vector<8x8xf32> -> vector<8x8xf32>
    %50 = vector.broadcast %44 : vector<8x1xi32> to vector<8x8xi32>
    %51 = vector.broadcast %45 : vector<1x8xi32> to vector<8x8xi32>
    %52 = arith.cmpi sge, %50, %51 : vector<8x8xi32>
    %53 = vector.broadcast %33 : vector<8x1xf32> to vector<8x8xf32>
    %54 = arith.mulf %49, %53 : vector<8x8xf32>
    %55 = vector.broadcast %43 : vector<1x8xf32> to vector<8x8xf32>
    %56 = arith.mulf %54, %55 : vector<8x8xf32>
    %cst_17 = arith.constant 0.000000e+00 : f32
    %57 = vector.broadcast %cst_17 : f32 to vector<8x8xf32>
    %58 = arith.select %52, %56, %57 : vector<8x8xi1>, vector<8x8xf32>
    %59 = arith.truncf %58 : vector<8x8xf32> to vector<8x8xbf16>
    %cst_18 = arith.constant dense<0.000000e+00> : vector<8x16xf32>
    %60 = tpu.matmul %59, %48, %cst_18 {dimension_numbers = #tpu.dot_dimension_numbers<[1], [0], [0], [1], [0, 0, 1, 1], [], []>} : vector<8x8xbf16>, vector<8x16xbf16>, vector<8x16xf32> -> vector<8x16xf32>
    %61 = arith.index_cast %arg2 : i32 to index
    %c0_19 = arith.constant 0 : index
    %c0_20 = arith.constant 0 : index
    %62 = vector.load %arg12[%61, %c0_19, %c0_20] : memref<4x8x16xf32, #tpu.memory_space<vmem>>, vector<1x8x16xf32>
    %63 = vector.shape_cast %62 : vector<1x8x16xf32> to vector<8x16xf32>
    %64 = vector.broadcast %33 : vector<8x1xf32> to vector<8x8xf32>
    %65 = arith.mulf %17, %64 : vector<8x8xf32>
    %66 = arith.truncf %65 : vector<8x8xf32> to vector<8x8xbf16>
    %67 = arith.truncf %63 : vector<8x16xf32> to vector<8x16xbf16>
    %cst_21 = arith.constant dense<0.000000e+00> : vector<8x16xf32>
    %68 = tpu.matmul %66, %67, %cst_21 {dimension_numbers = #tpu.dot_dimension_numbers<[1], [0], [0], [1], [0, 0, 1, 1], [], []>} : vector<8x8xbf16>, vector<8x16xbf16>, vector<8x16xf32> -> vector<8x16xf32>
    %69 = arith.addf %60, %68 : vector<8x16xf32>
    %70 = vector.broadcast %38 : vector<8x1xf32> to vector<8x8xf32>
    %71 = arith.mulf %22, %70 : vector<8x8xf32>
    %72 = arith.truncf %71 : vector<8x8xf32> to vector<8x8xbf16>
    %cst_22 = arith.constant dense<0.000000e+00> : vector<8x16xf32>
    %73 = tpu.matmul %72, %48, %cst_22 {dimension_numbers = #tpu.dot_dimension_numbers<[0], [0], [1], [1], [0, 1, 1, 1], [], []>} : vector<8x8xbf16>, vector<8x16xbf16>, vector<8x16xf32> -> vector<8x16xf32>
    %74 = vector.extract_strided_slice %38 {offsets = [0, 0], sizes = [1, 1], strides = [1, 1]} : vector<8x1xf32> to vector<1x1xf32>
    %75 = vector.broadcast %74 : vector<1x1xf32> to vector<8x16xf32>
    %76 = arith.mulf %63, %75 : vector<8x16xf32>
    %77 = arith.addf %76, %73 : vector<8x16xf32>
    %78 = arith.index_cast %arg2 : i32 to index
    %c0_23 = arith.constant 0 : index
    %c0_24 = arith.constant 0 : index
    %79 = vector.load %arg12[%78, %c0_23, %c0_24] : memref<4x8x16xf32, #tpu.memory_space<vmem>>, vector<1x8x16xf32>
    %80 = vector.shape_cast %79 : vector<1x8x16xf32> to vector<8x16xf32>
    %81 = vector.shape_cast %77 : vector<8x16xf32> to vector<1x8x16xf32>
    tpu.vector_store %arg12[%78, %c0_23, %c0_24], %81 {strides = array<i32>} : memref<4x8x16xf32, #tpu.memory_space<vmem>>, vector<1x8x16xf32>,
    %82 = arith.mulf %69, %69 : vector<8x16xf32>
    %cst_25 = arith.constant dense<0.000000e+00> : vector<8xf32>
    %83 = vector.multi_reduction <add>, %82, %cst_25 [1] : vector<8x16xf32> to vector<8xf32>
    %84 = vector.shape_cast %83 : vector<8xf32> to vector<8x1xf32>
    %cst_26 = arith.constant 1.600000e+01 : f32
    %85 = vector.broadcast %cst_26 : f32 to vector<8x1xf32>
    %86 = arith.divf %84, %85 : vector<8x1xf32>
    %cst_27 = arith.constant 9.99999974E-6 : f32
    %87 = vector.broadcast %cst_27 : f32 to vector<8x1xf32>
    %88 = arith.addf %86, %87 : vector<8x1xf32>
    %89 = math.rsqrt %88 : vector<8x1xf32>
    %90 = vector.broadcast %89 : vector<8x1xf32> to vector<8x16xf32>
    %91 = arith.mulf %69, %90 : vector<8x16xf32>
    %c0_28 = arith.constant 0 : index
    %c0_29 = arith.constant 0 : index
    %92 = vector.load %arg10[%c0_28, %c0_29] : memref<1x16xf32, #tpu.memory_space<vmem>>, vector<1x16xf32>
    %93 = vector.broadcast %92 : vector<1x16xf32> to vector<8x16xf32>
    %94 = arith.mulf %91, %93 : vector<8x16xf32>
    %95 = arith.negf %24 : vector<8x16xf32>
    %96 = math.exp %95 : vector<8x16xf32>
    %cst_30 = arith.constant 1.000000e+00 : f32
    %97 = vector.broadcast %cst_30 : f32 to vector<8x16xf32>
    %98 = arith.addf %97, %96 : vector<8x16xf32>
    %99 = arith.divf %97, %98 : vector<8x16xf32>
    %100 = arith.mulf %24, %99 : vector<8x16xf32>
    %101 = arith.mulf %94, %100 : vector<8x16xf32>
    %102 = arith.truncf %101 : vector<8x16xf32> to vector<8x16xbf16>
    %c0_31 = arith.constant 0 : index
    %c0_32 = arith.constant 0 : index
    %c0_33 = arith.constant 0 : index
    %103 = vector.load %arg7[%c0_31, %c0_32, %c0_33] : memref<1x16x32xbf16, #tpu.memory_space<vmem>>, vector<1x16x32xbf16>
    %104 = vector.shape_cast %103 : vector<1x16x32xbf16> to vector<16x32xbf16>
    %cst_34 = arith.constant dense<0.000000e+00> : vector<8x32xf32>
    %105 = tpu.matmul %102, %104, %cst_34 {dimension_numbers = #tpu.dot_dimension_numbers<[1], [0], [0], [1], [0, 0, 1, 1], [], []>} : vector<8x16xbf16>, vector<16x32xbf16>, vector<8x32xf32> -> vector<8x32xf32>
    %c0_i32_35 = arith.constant 0 : i32
    %106 = arith.cmpi eq, %arg2, %c0_i32_35 : i32
    %107 = arith.extui %106 : i1 to i32
    %c0_i32_36 = arith.constant 0 : i32
    %108 = arith.cmpi ne, %107, %c0_i32_36 : i32
    scf.if %108 {
      %c0_39 = arith.constant 0 : index
      %c0_40 = arith.constant 0 : index
      %c0_41 = arith.constant 0 : index
      %112 = vector.load %arg11[%c0_39, %c0_40, %c0_41] : memref<1x8x32xf32, #tpu.memory_space<vmem>>, vector<1x8x32xf32>
      %113 = vector.shape_cast %112 : vector<1x8x32xf32> to vector<8x32xf32>
      %114 = vector.shape_cast %105 : vector<8x32xf32> to vector<1x8x32xf32>
      tpu.vector_store %arg11[%c0_39, %c0_40, %c0_41], %114 {strides = array<i32>} : memref<1x8x32xf32, #tpu.memory_space<vmem>>, vector<1x8x32xf32>,
    } else {
    }
    %c0_i32_37 = arith.constant 0 : i32
    %109 = arith.cmpi sgt, %arg2, %c0_i32_37 : i32
    %110 = arith.extui %109 : i1 to i32
    %c0_i32_38 = arith.constant 0 : i32
    %111 = arith.cmpi ne, %110, %c0_i32_38 : i32
    scf.if %111 {
      %c0_39 = arith.constant 0 : index
      %c0_40 = arith.constant 0 : index
      %c0_41 = arith.constant 0 : index
      %112 = vector.load %arg11[%c0_39, %c0_40, %c0_41] : memref<1x8x32xf32, #tpu.memory_space<vmem>>, vector<1x8x32xf32>
      %113 = vector.shape_cast %112 : vector<1x8x32xf32> to vector<8x32xf32>
      %114 = arith.addf %113, %105 : vector<8x32xf32>
      %c0_42 = arith.constant 0 : index
      %c0_43 = arith.constant 0 : index
      %c0_44 = arith.constant 0 : index
      %115 = vector.load %arg11[%c0_42, %c0_43, %c0_44] : memref<1x8x32xf32, #tpu.memory_space<vmem>>, vector<1x8x32xf32>
      %116 = vector.shape_cast %115 : vector<1x8x32xf32> to vector<8x32xf32>
      %117 = vector.shape_cast %114 : vector<8x32xf32> to vector<1x8x32xf32>
      tpu.vector_store %arg11[%c0_42, %c0_43, %c0_44], %117 {strides = array<i32>} : memref<1x8x32xf32, #tpu.memory_space<vmem>>, vector<1x8x32xf32>,
    } else {
    }
    return
  }
  func.func @transform_0(%arg0: i32, %arg1: i32, %arg2: i32) -> i32 {
    %c0_i32 = arith.constant 0 : i32
    %c0_i32_0 = arith.constant 0 : i32
    return %c0_i32 : i32
  }
  func.func @transform_1(%arg0: i32, %arg1: i32, %arg2: i32) -> (i32, i32, i32) {
    %c0_i32 = arith.constant 0 : i32
    %c0_i32_0 = arith.constant 0 : i32
    return %arg0, %arg1, %c0_i32 : i32, i32, i32
  }
  func.func @transform_2(%arg0: i32, %arg1: i32, %arg2: i32) -> (i32, i32, i32) {
    %c0_i32 = arith.constant 0 : i32
    %c0_i32_0 = arith.constant 0 : i32
    %c0_i32_1 = arith.constant 0 : i32
    return %arg2, %c0_i32, %c0_i32_0 : i32, i32, i32
  }
  func.func @transform_3(%arg0: i32, %arg1: i32, %arg2: i32) -> (i32, i32, i32) {
    %c0_i32 = arith.constant 0 : i32
    %c0_i32_0 = arith.constant 0 : i32
    %c0_i32_1 = arith.constant 0 : i32
    return %arg2, %c0_i32, %c0_i32_0 : i32, i32, i32
  }
  func.func @transform_4(%arg0: i32, %arg1: i32, %arg2: i32) -> (i32, i32, i32) {
    %c0_i32 = arith.constant 0 : i32
    %c0_i32_0 = arith.constant 0 : i32
    %c0_i32_1 = arith.constant 0 : i32
    return %arg2, %c0_i32, %c0_i32_0 : i32, i32, i32
  }
  func.func @transform_5(%arg0: i32, %arg1: i32, %arg2: i32) -> (i32, i32) {
    %c0_i32 = arith.constant 0 : i32
    %c0_i32_0 = arith.constant 0 : i32
    return %arg1, %c0_i32 : i32, i32
  }
  func.func @transform_6(%arg0: i32, %arg1: i32, %arg2: i32) -> (i32, i32) {
    %c0_i32 = arith.constant 0 : i32
    %c0_i32_0 = arith.constant 0 : i32
    return %arg1, %c0_i32 : i32, i32
  }
  func.func @transform_7(%arg0: i32, %arg1: i32, %arg2: i32) -> (i32, i32) {
    %c0_i32 = arith.constant 0 : i32
    %c0_i32_0 = arith.constant 0 : i32
    %c0_i32_1 = arith.constant 0 : i32
    return %c0_i32, %c0_i32_0 : i32, i32
  }
  func.func @transform_8(%arg0: i32, %arg1: i32, %arg2: i32) -> (i32, i32, i32) {
    %c0_i32 = arith.constant 0 : i32
    %c0_i32_0 = arith.constant 0 : i32
    return %arg0, %arg1, %c0_i32 : i32, i32, i32
  }
}

</mosaic_0001>

<bundles_post_ra>
// kernel: tpu_custom_call.1
= control target key start
LH: loop header
LB: loop body
LE: loop exit
PB: predicated region body
PF: predicated region fallthrough
CT: control target
= control target key end

     0   :  { %s2109_s0 = inlined_call_operand.vmem [shape: f32[4], index: 0, kind: input, shape index: {}]   ;;  %s2110_s1 = inlined_call_operand.vmem [shape: bf16[2,16,32], index: 1, kind: input, shape index: {}]   ;;  %s2111_s2 = inlined_call_operand.hbm [shape: bf16[4,32,32], index: 2, kind: input, shape index: {}]   ;;  %s2112_s3 = inlined_call_operand.hbm [shape: bf16[4,32,32], index: 3, kind: input, shape index: {}]   ;;  %s2113_s4 = inlined_call_operand.vmem [shape: bf16[4,16,32], index: 4, kind: input, shape index: {}]   ;;  %s2114_s5 = inlined_call_operand.vmem [shape: f32[16,8], index: 5, kind: input, shape index: {}]   ;;  %s2115_s6 = inlined_call_operand.vmem [shape: f32[16,8], index: 6, kind: input, shape index: {}]   ;;  %s2116_s7 = inlined_call_operand.vmem [shape: f32[1,16], index: 7, kind: input, shape index: {}]   ;;  %s2117_s8 = inlined_call_operand.hbm [shape: f32[2,16,32], index: 8, kind: output, shape index: {}]  }
   0x1   :  { %2138 = sst [smem:[#allocation27_spill]] %s2109_s0 }
   0x2   :  { %2139 = sst [smem:[#allocation28_spill]] %s2110_s1 }
   0x3   :  { %2140 = sst [smem:[#allocation29_spill]] %s2111_s2 }
   0x4   :  { %2141 = sst [smem:[#allocation30_spill]] %s2112_s3 }
   0x5   :  { %2142 = sst [smem:[#allocation31_spill]] %s2113_s4 }
   0x6   :  { %2143 = sst [smem:[#allocation32_spill]] %s2115_s6 }
   0x7   :  { %2144 = sst [smem:[#allocation33_spill]] %s2116_s7 }
   0x8   :  { %2145 = sst [smem:[#allocation34_spill]] %s2117_s8 }
   0x9   :  { %13 = vsyncpa [#allocation6], 0 }
   0xa   :  { %14 = vsyncpa [#allocation4], 0 }
   0xb   :  { %16 = vsyncpa [#allocation4 + $0x1], 0 }
   0xc   :  { %17 = vsyncpa [#allocation9], 0 }
   0xd   :  { %19 = vsyncpa [#allocation9 + $0x1], 0 }
   0xe   :  { %20 = vsyncpa [#allocation5], 0 }
   0xf   :  { %22 = vsyncpa [#allocation5 + $0x1], 0  ;;  %s1726_s27 = smov 0   ;;  %s1728_s28 = smov 0  }
  0x10   :  { %s1730_s29 = smov 0   ;;  %s1732_s30 = smov 0  }
  0x11   :  { %s1734_s9 = smov 0   ;;  %s1736_s10 = smov 0  }
  0x12   :  { %s1738_s11 = smov 0   ;;  %s1740_s12 = smov 0  }
  0x13   :  { %s1742_s13 = smov 0   ;;  %s1744_s14 = smov 0  }
  0x14   :  { %s1746_s15 = smov 0   ;;  %s1748_s16 = smov 0  }
  0x15   :  { %s1750_s17 = smov 0  }
  0x16 LB: > { %2146 = sst [smem:[#allocation15_spill]] %s1617_s27  ;;  %s1177_s18 = sadd.s32 4294967295, %s1665_s17   ;;  %s1665_s17 = sphi %s1750_s17, %s28_s17   ;;  %s1661_s16 = sphi %s1748_s16, %s2194_s16   ;;  %s1657_s15 = sphi %s1746_s15, %s2193_s15   ;;  %s1653_s14 = sphi %s1744_s14, %s2192_s14   ;;  %s1649_s13 = sphi %s1742_s13, %s2191_s13   ;;  %s1645_s12 = sphi %s1740_s12, %s2190_s12   ;;  %s1641_s11 = sphi %s1738_s11, %s2189_s11   ;;  %s1637_s10 = sphi %s1736_s10, %s2188_s10   ;;  %s1633_s9 = sphi %s1734_s9, %s2199_s9   ;;  %s1629_s30 = sphi %s1732_s30, %s2198_s30   ;;  %s1625_s29 = sphi %s1730_s29, %s2197_s29   ;;  %s1621_s28 = sphi %s1728_s28, %s2196_s28   ;;  %s1617_s27 = sphi %s1726_s27, %s2195_s27  }
  0x17   : > { %2147 = sst [smem:[#allocation16_spill]] %s1637_s10  ;;  %s1178_s19 = sadd.s32 4294967294, %s1665_s17  }
  0x18   : > { %2148 = sst [smem:[#allocation17_spill]] %s1653_s14  ;;  %p110_p0 = scmp.ne.s32.totalorder %s1637_s10, %s1633_s9 }
  0x19   : > { %2149 = sst [smem:[#allocation18_spill]] %s1657_s15  ;;  %p111_p1 = scmp.eq.s32.totalorder %s1665_s17, 0 }
  0x1a   : > { %2150 = sst [smem:[#allocation19_spill]] %s1661_s16  ;;  %p116_p2 = scmp.ne.s32.totalorder %s1633_s9, %s1629_s30 }
  0x1b   : > { %2151 = sst [smem:[#allocation20_spill]] %s1665_s17  ;;  %p1796_p3 = scmp.eq.s32.totalorder %s1177_s18, 0 }
  0x1c   : > { %p1801_p4 = por %p111_p1, %p110_p0  ;;  %p266_p5 = scmp.ne.s32.totalorder %s1625_s29, %s1621_s28 }
  0x1d   : > { %p1809_p6 = por %p1796_p3, %p116_p2  ;;  %p267_p7 = scmp.eq.s32.totalorder %s1177_s18, 15 }
  0x1e   : > { %p272_p8 = scmp.ne.s32.totalorder %s1621_s28, %s1617_s27  ;;  %p273_p9 = scmp.eq.s32.totalorder %s1178_s19, 15 }
  0x1f   : > { %s2154_s24 = scalar_select %p1809_p6, 1, 0 }
  0x20   : > { %p1815_p10 = por %p267_p7, %p266_p5  ;;  %p1179_p11 = scmp.ge.s32.totalorder %s1665_s17, 1 }
  0x21   : > { %p1820_p12 = por %p273_p9, %p272_p8  ;;  %p280_p13 = scmp.lt.s32.totalorder %s1665_s17, 17 }
  0x22   : > { %s2155_s25 = scalar_select %p1815_p10, 1, 0 }
  0x23   : > { %s2157_s26 = scalar_select %p1820_p12, 1, 0 }
  0x24   : > { %2156 = sst [smem:[#allocation21_spill]] %s2155_s25  ;;  %p1828_p0 = pnand %p1179_p11, %p280_p13 }
  0x25   : > { %2158 = sst [smem:[#allocation22_spill]] %s2157_s26  ;;  %p1314_p2 = scmp.lt.s32.totalorder %s1665_s17, 16 }
  0x26   : > { %s2159_s0 = sld [smem:[#allocation27_spill]]  ;;  %p1298_p1 = pneg %p1828_p0 }
  0x27   : > { %s2160_s8 = scalar_select %p1828_p0, 1, 0 }
  0x28   : > { %p1299_p5 = pnand %p1298_p1, %p1796_p3  ;;  %p1839_p7 = pnand %p1314_p2, %p1801_p4 }
  0x2a   : > { %p1452_p9 = pneg %p1299_p5 }
  0x2c   : > { %s293_s20 = sshll.u32 %s2159_s0, 4  ;;  %s294_s20 = int_to_ptr.vmem [resolvable:$true] %s293_s20 }
  0x2d   : > { %s1450_s19 = scalar_lea.vmem %s294_s20, 16  ;;  %p1458_p13 = scmp.lt.s32.totalorder %s294_s20, %s294_s20 }
  0x2e   : > { %p1451_p8 = scmp.ne.s32.totalorder %s294_s20, %s1450_s19  ;;  %p1459_p10 = scmp.lt.s32.totalorder %s1450_s19, %s1450_s19 }
  0x30   : > { %p1453_p12 = pnand %p1452_p9, %p1451_p8  ;;  %p1460_p6 = por %p1459_p10, %p1458_p13 }
  0x32   : > { %p1454_p11 = pneg %p1453_p12 }
  0x34   : > { %p1461_p0 = pnand %p1460_p6, %p1454_p11 }
  0x36   : > { %1464 = shalt.err (!%p1461_p0)
}
  0x37   : > { %s1667_s22 = smov [#allocation3]   ;;  %s40_s23 = sadd.s32 1, %s1653_s14 }
  0x38   : > { %1301 = dma.vmem_to_smem (!%p1299_p5), %s294_s20, 16, %s1667_s22, [#allocation6]  }
  0x39   : > { %s43_s30 = sadd.s32 1, %s1657_s15  ;;  %p41_p4 = scmp.ge.s32.totalorder %s40_s23, 4 }
  0x3a   : > { %s47_s19 = sadd.s32 1, %s1661_s16  ;;  %s1847_s0 = sand.u32 1, %s1637_s10  }
  0x3b   : > { %s2129_s26 = sshll.u32 %s1653_s14, 8  ;;  %s2201_s23 = smov (%p41_p4, %s40_s23), 0 }
  0x3c   : > { %2162 = sst [smem:[#allocation23_spill]] %s2201_s23  ;;  %s2203_s30 = smov (!%p41_p4, %s43_s30), %s1657_s15 }
  0x3d   : > { %s100_s27 = ssub.s32 %s1653_s14, %s2201_s23  ;;  %p45_p6 = scmp.ge.s32.totalorder %s2203_s30, 2 }
  0x3e   : > { %p101_p10 = scmp.eq.s32.totalorder %s100_s27, 0  ;;  %s2131_s20 = sshll.u32 %s1847_s0, 4 }
  0x3f   : > { %s2163_s2 = sld [smem:[#allocation29_spill]]  ;;  %s2205_s30 = smov (%p45_p6, %s2203_s30), 0 }
  0x40   : > { %2164 = sst [smem:[#allocation24_spill]] %s2205_s30  ;;  %s2207_s19 = smov (!%p45_p6, %s47_s19), %s1661_s16 }
  0x41   : > { %s2165_s7 = sadd.s32 1, %s1637_s10  ;;  %p49_p12 = scmp.ge.s32.totalorder %s2207_s19, 2 }
  0x42   : > { %s1869_s4 = scalar_select %p101_p10, %s1637_s10, %s2165_s7  }
  0x43   : > { %s252_s23 = ssub.s32 %s1657_s15, %s2205_s30  ;;  %s2209_s19 = smov (%p49_p12, %s2207_s19), 0 }
  0x44   : > { %2166 = sst [smem:[#allocation25_spill]] %s1869_s4  ;;  %s322_s27 = scalar_lea.vmem [#allocation7], %s2131_s20 }
  0x45   : > { %s1861_s25 = scalar_lea.hbm %s2163_s2, %s2129_s26  ;;  %2167 = sst [smem:[#allocation26_spill]] %s2209_s19 }
  0x46   : > { %s329_s6 = sshll.u32 %s322_s27, 4  ;;  %s251_s1 = ssub.s32 %s1661_s16, %s2209_s19  ;;  %s330_s6 = int_to_ptr.vmem [resolvable:$true] %s329_s6 }
  0x47   : > { %s253_s17 = sor.u32 %s252_s23, %s251_s1  ;;  %s319_s22 = scalar_lea.sflag [#allocation4], %s1847_s0 }
  0x48   : > { %p254_p0 = scmp.eq.s32.totalorder %s253_s17, 0  ;;  %p1467_p1 = pneg %p1839_p7 }
  0x49   : > { %s1478_s26 = scalar_lea.vmem %s330_s6, 256  ;;  %s1668_s7 = smov [#allocation7]  }
  0x4a   : > { %p1479_p2 = scmp.ne.s32.totalorder %s330_s6, %s1478_s26  ;;  %s1483_s2 = sshll.u32 %s1668_s7, 4  ;;  %s1484_s2 = int_to_ptr.vmem [resolvable:$false] %s1483_s2 }
  0x4b   : > { %s1485_s30 = scalar_lea.vmem %s1484_s2, 512  ;;  %p1486_p9 = scmp.lt.s32.totalorder %s330_s6, %s1484_s2 }
  0x4c   : > { %p1481_p5 = pnand %p1479_p2, %p1467_p1  ;;  %p1487_p11 = scmp.lt.s32.totalorder %s1485_s30, %s1478_s26 }
  0x4e   : > { %p1482_p8 = pneg %p1481_p5  ;;  %p1488_p13 = por %p1487_p11, %p1486_p9 }
  0x50   : > { %p1489_p4 = pnand %p1488_p13, %p1482_p8 }
  0x52   : > { %1492 = shalt.err (!%p1489_p4)
}
  0x53   : > { %s1669_s1 = smov 64   ;;  %s1670_s23 = smov 4  }
  0x54   : > { %1305 = dma.hbm_to_vmem [thread:$0]  (!%p1839_p7), %s1861_s25, 256, %s330_s6, %s319_s22, %s1669_s1, %s1669_s1, %s1670_s23  }
  0x55   : > { %s2168_s27 = sadd.s32 1, %s1625_s29  ;;  %s2169_s2 = sshll.u32 %s1653_s14, 8 }
  0x56   : > { %s1892_s7 = scalar_select %p254_p0, %s1625_s29, %s2168_s27  }
  0x57   : > { %s2170_s3 = sld [smem:[#allocation30_spill]]  ;;  %s2171_s19 = sshll.u32 %s1847_s0, 4 }
  0x58   : > { %s343_s16 = scalar_lea.vmem [#allocation8], %s2171_s19  ;;  %s340_s4 = scalar_lea.sflag [#allocation9], %s1847_s0 }
  0x59   : > { %s350_s15 = sshll.u32 %s343_s16, 4  ;;  %s1671_s6 = smov [#allocation8]   ;;  %s351_s15 = int_to_ptr.vmem [resolvable:$true] %s350_s15 }
  0x5a   : > { %s1506_s10 = scalar_lea.vmem %s351_s15, 256  ;;  %s1511_s25 = sshll.u32 %s1671_s6, 4  ;;  %s1512_s25 = int_to_ptr.vmem [resolvable:$false] %s1511_s25 }
  0x5b   : > { %p1507_p6 = scmp.ne.s32.totalorder %s351_s15, %s1506_s10  ;;  %s1513_s17 = scalar_lea.vmem %s1512_s25, 512 }
  0x5c   : > { %p1514_p0 = scmp.lt.s32.totalorder %s351_s15, %s1512_s25  ;;  %p1515_p2 = scmp.lt.s32.totalorder %s1513_s17, %s1506_s10 }
  0x5d   : > { %s349_s20 = scalar_lea.hbm %s2170_s3, %s2169_s2  ;;  %p1509_p10 = pnand %p1507_p6, %p1467_p1 }
  0x5e   : > { %p1516_p5 = por %p1515_p2, %p1514_p0 }
  0x5f   : > { %p1510_p12 = pneg %p1509_p10 }
  0x61   : > { %p1517_p8 = pnand %p1516_p5, %p1510_p12 }
  0x63   : > { %1520 = shalt.err (!%p1517_p8)
}
  0x64   : > { %1308 = dma.hbm_to_vmem [thread:$0]  (!%p1839_p7), %s349_s20, 256, %s351_s15, %s340_s4, %s1669_s1, %s1669_s1, %s1670_s23  }
  0x65   : > { %p2172_p9 = scmp.ne.s32.totalorder %s2160_s8, 0 }
  0x67   : > { %384 = sbr.rel (%p2172_p9) target bundleno = 1382 (0x566), region = 52 }
  0x6c   : > { %1600 = dma.done.wait (%p1796_p3), [#allocation6], 16  }
  0x6d   : > { %1602 = vsyncadd (%p1796_p3), [#allocation6], 4294967280  ;;  %s390_s0 = sand.u32 1, %s1633_s9   ;;  %p2173_p1 = scmp.ne.s32.totalorder %s2154_s24, 0 }
  0x6e   : > { %s1190_s16 = sshll.u32 %s390_s0, 4  ;;  %s391_s10 = scalar_lea.sflag [#allocation4], %s390_s0 }
  0x6f   : > { %s1914_s19 = scalar_lea.vmem [#allocation7], %s1190_s16 }
  0x70   : > { %1604 = dma.done.wait (%p2173_p1), %s391_s10, 256  }
  0x71   : > { %1606 = vsyncadd (%p2173_p1), %s391_s10, 4294967040  ;;  %s400_s4 = scalar_lea.sflag [#allocation9], %s390_s0  ;;  %s1920_s8 = scalar_lea.vmem [#allocation8], %s1190_s16 }
  0x72   : > { %1608 = dma.done.wait (%p2173_p1), %s400_s4, 256  }
  0x73   : > { %1610 = vsyncadd (%p2173_p1), %s400_s4, 4294967040 }
  0x74   : > { %408 = sfence }
  0x75   : > { %s2136_s15 = sand.u32 1, %s1621_s28   ;;  %p463_p3 = scmp.lt.s32.totalorder %s1649_s13, 1 }
  0x76   : > { %s1192_s21 = sshll.u32 %s2136_s15, 3  ;;  %p465_p7 = scmp.lt.s32.totalorder %s1645_s12, 1 }
  0x77   : > { %s464_s18 = scalar_select %p463_p3, %s1649_s13, 1 }
  0x78   : > { %s466_s20 = scalar_select %p465_p7, %s1645_s12, 1 }
  0x79   : > { %s1193_s22 = sshll.u32 %s464_s18, 1  ;;  %p471_p11 = scmp.lt.s32.totalorder %s1641_s11, 3 }
  0x7a   : > { %s468_s24 = sadd.s32 %s1193_s22, %s466_s20  ;;  %s1197_s1 = sshll.u32 %s466_s20, 3 }
  0x7b   : > { %s1194_s23 = sshll.u32 %s468_s24, 2  ;;  %s479_s26 = scalar_lea.vmem %s2114_s5, %s1197_s1 }
  0x7c   : > { %s2174_s25 = sld [smem:[#allocation28_spill]]  ;;  %s1951_s24 = scalar_lea.vmem [#allocation10], %s1192_s21 }
  0x7d   : > { %s2175_s10 = sld [smem:[#allocation32_spill]]  ;;  %p1199_p13 = scmp.ne.s32.totalorder %s1645_s12, 0 }
  0x7e   : > { %s472_s15 = scalar_select %p471_p11, %s1641_s11, 3 }
  0x7f   : > { %s2176_s22 = sld [smem:[#allocation31_spill]]  ;;  %s1200_s27 = sshll.u32 (!%p1199_p13), %s1641_s11, 3 }
  0x80   : > { %s1225_s3 = sshll.u32 %s472_s15, 3 }
  0x81   : > { %488 = sbr.rel (%p1199_p13) target bundleno = 136 (0x88), region = 68 }
  0x82   : > { %s1940_s17 = scalar_lea.vmem %s2174_s25, %s1194_s23  ;;  %s490_s23 = scalar_lea.vmem (!%p1199_p13), [#allocation2], %s1200_s27 }
  0x83   : > { %s483_s4 = scalar_lea.vmem %s2175_s10, %s1197_s1 }
  0x85   : > { %s1949_s20 = scalar_lea.vmem %s2176_s22, %s1225_s3 }
  0x86   : > { %vm491_vm0 = vcmask 130048   ;;  %v1672_v0 = vmov 0.0  }
  0x87   : > { %492 = vst.msk [vmem:[%s490_s23] sm:$0xff] %vm491_vm0, %v1672_v0 }
  0x88 PF: > { %v1433_v1 = vld [vmem:[%s1914_s19 + $0x8] sm:$0xff]   ;;  %v1673_v2 = vmov 0.0   ;;  %v1434_v3 = vld [vmem:[%s1914_s19] sm:$0xff]   ;;  %vm1674_vm1 = vmmov 0   ;;  %s1675_s3 = smov 24   ;;  %vm510_vm2 = vcmask 261120   ;;  %v638_v19 = vlaneseq }
  0x89   : > { %1242 = vmatprep.subr.bf16.mxu0 %v1673_v2  ;;  %1250 = vmatprep.subr.bf16.mxu1 %v1673_v2  ;;  %v611_v4 = vld [vmem:[%s483_s4] sm:$0xff]  ;;  %v1435_v6 = vld [vmem:[%s1920_s8 + $0x8] sm:$0xff]   ;;  %s1676_s14 = smov 16   ;;  %s1677_s19 = smov 120   ;;  %vm723_vm3 = vcmask 1043456   ;;  %vm662_vm4 = vcmask 64512  }
  0x8a   : > { %1243 = vmatpush3.bf16.msra.mxu0 %v1433_v1  ;;  %1246 = vmatprep.mubr.msk.bf16.mxu0 %vm1674_vm1, %v1673_v2  ;;  %v1961_v5 = vld [vmem:[%s479_s26] sm:$0xff]  ;;  %v1983_v20 = vshrl.u32 %v638_v19, 7  ;;  %s637_s15 = sld [smem:[#allocation3 + %s1641_s11]]  ;;  %s1208_s21 = sshll.u32 %s1641_s11, 3  ;;  %v642_v58 = vand.u32 127, %v638_v19  ;;  %vm884_vm6 = vcmask 130048  }
  0x8b   : > { %1244 = vmatprep.subr.bf16.mxu0 %v1673_v2  ;;  %628 = vrot.lane.b32.xlu0 %v611_v4, %s1675_s3  ;;  %v1436_v7 = vld [vmem:[%s1920_s8] sm:$0xff]   ;;  %s1678_s8 = smov 8   ;;  %s1989_s1 = scalar_lea.vmem [#allocation2], %s1208_s21 }
  0x8c   : > { %1254 = vmatprep.mubr.msk.bf16.mxu1 %vm1674_vm1, %v1673_v2  ;;  %1251 = vmatpush3.bf16.msra.mxu1 %v1435_v6  ;;  %v493_v8 = vld [vmem:[%s1940_s17] sm:$0xf]  ;;  %v640_v22 = vcvt.s32.f32 %v1983_v20  ;;  %s1679_s2 = smov 112   ;;  %v643_v59 = vcvt.s32.f32 %v642_v58  ;;  %vm709_vm5 = vcmp.ge.s32.totalorder %v1983_v20, %v642_v58  ;;  %s2177_s6 = sld [smem:[#allocation33_spill]] }
  0x8d   : > { %1252 = vmatprep.subr.bf16.mxu1 %v1673_v2  ;;  %p1216_p4 = scmp.ne.s32.totalorder %s1641_s11, 0 }
  0x8e   : > { %1245 = vmatpush3.bf16.msra.mxu0 %v1434_v3  ;;  %v648_v23 = vsub.f32 8.0, %v640_v22  ;;  %v1992_v29 = vld [vmem:[%s1989_s1] sm:$0xff]  ;;  %v652_v60 = vsub.f32 0.0, %v643_v59 }
  0x8f   : > { %624 = vrot.lane.b32.xlu0 %v1961_v5, %s1676_s14  ;;  %1258 = vmatprep.subr.bf16.mxu0 %v1673_v2  ;;  %v719_v30 = vpack.c.bf16 %v1992_v29, %v1992_v29 }
  0x90   : > { %1253 = vmatpush3.bf16.msra.mxu1 %v1436_v7  ;;  %v644_v24 = vstv %s637_s15 }
  0x91   : > { %1247 = vmatmul.mubr.msk.bf16.vlgmr.msra.gmra.mxu0 %vm510_vm2, %v493_v8  ;;  %1264 = vmatprep.subr.bf16.mxu1 %v1673_v2  ;;  %v649_v25 = vmul.f32 %v648_v23, %v644_v24  ;;  %v725_v32 = vsel %vm723_vm3, %v719_v30, 0  ;;  %v645_v44 = vmul.f32 %v644_v24, %v640_v22  ;;  %v653_v61 = vmul.f32 %v652_v60, %v644_v24  ;;  %v1437_v22 = vld [vmem:[%s1949_s20] sm:$0xff]  }
  0x92   : > { %1260 = vmatprep.mubr.msk.bf16.mxu0 %vm1674_vm1, %v1673_v2 }
  0x93   : > { %1255 = vmatmul.mubr.msk.bf16.vlgmr.msra.gmra.mxu1 %vm510_vm2, %v493_v8  ;;  %v650_v26 = vmul.f32 1.442695, %v649_v25  ;;  %v646_v45 = vmul.f32 1.442695, %v645_v44  ;;  %v654_v62 = vmul.f32 1.442695, %v653_v61 }
  0x94   : > { %1266 = vmatprep.mubr.msk.bf16.mxu1 %vm1674_vm1, %v1673_v2  ;;  %1265 = vmatpush3.bf16.msra.mxu1 %v725_v32 }
  0x95   : > { %1276 = vmatprep.subr.bf16.mxu1 %v1673_v2 }
  0xfd   : > { %v629_v9 = vpop.permute.xlu0 %628 }
 0x101   : > { %v625_v31 = vpop.permute.xlu0 %624 }
 0x151   : > { %v548_v10 = vpop.f32.mrf.mxu0 }
 0x152   : > { %v631_v11 = vmul.f32 %v629_v9, %v548_v10  ;;  %v627_v33 = vmul.f32 %v625_v31, %v548_v10  ;;  %v612_v48 = vmul.f32 %v1961_v5, %v548_v10 }
 0x153   : > { %v1248_v12 = vpop.f32.mrf.mxu0  ;;  %v1980_v13 = vpop.f32.mrf.mxu1 }
 0x154   : > { %633 = vrot.lane.b32.xlu1 %v631_v11, %s1677_s19  ;;  %v1213_v21 = vmul.f32 -1.442695, %v1980_v13  ;;  %v658_v56 = vpack.c.bf16 %v1980_v13, %v1980_v13 }
 0x155   : > { %v551_v14 = vpop.f32.mrf.mxu0  ;;  %v1256_v15 = vpop.f32.mrf.mxu1 }
 0x156   : > { %1438 = vpow2.f32 %v1213_v21  ;;  %v771_v57 = vsel %vm723_vm3, %v658_v56, 0 }
 0x157   : > { %v1249_v16 = vpop.f32.mrf.mxu0  ;;  %v607_v17 = vpop.f32.mrf.mxu1  ;;  %1440 = vpow2.f32 %v650_v26 }
 0x158   : > { %614 = vrot.lane.b32.xlu1 %v611_v4, %s1678_s8 }
 0x159   : > { %v1257_v18 = vpop.f32.mrf.mxu1 }
 0x163   : > { %v1439_v27 = vpop.eup %1438 }
 0x164   : > { %v906_v28 = vadd.f32 1.0, %v1439_v27  ;;  %v1998_v36 = vpop.eup %1440  ;;  %v1212_v27 = vld [vmem:[%s2177_s6] ss:$0 sm:$0xff] }
 0x166   : > { %1442 = vrcp.f32 %v906_v28 }
 0x167   : > { %1444 = vpow2.f32 %v646_v45 }
 0x168   : > { %1446 = vpow2.f32 %v654_v62 }
 0x173   : > { %v1443_v41 = vpop.eup %1442 }
 0x174   : > { %v909_v43 = vmul.f32 %v1443_v41, %v1980_v13  ;;  %v1445_v49 = vpop.eup %1444 }
 0x175   : > { %v1447_v63 = vpop.eup %1446 }
 0x1c6   : > { %v634_v34 = vpop.permute.xlu1 %633 }
 0x1c7   : > { %v636_v35 = vadd.f32 %v634_v34, %v627_v33  ;;  %v880_v33 = vsub.s32 0, %v1983_v20 }
 0x1c9   : > { %v657_v37 = vpack.c.bf16 %v636_v35, %v636_v35  ;;  %v813_v39 = vmul.f32 %v1998_v36, %v636_v35  ;;  %v881_v34 = vrot.slane %v1998_v36, %v880_v33 }
 0x1ca   : > { %v615_v38 = vpop.permute.xlu1 %614 }
 0x1cb   : > { %v617_v40 = vmul.f32 %v615_v38, %v548_v10  ;;  %660 = vrot.lane.b32.xlu0 %v657_v37, %s1679_s2  ;;  %v814_v42 = vpack.c.bf16 %v813_v39, %v813_v39  ;;  %v882_v35 = vmul.f32 %v881_v34, %v1992_v29 }
 0x1cd   : > { %619 = vrot.lane.b32.xlu1 %v617_v40, %s1677_s19 }
 0x1d1   : > { %816 = vrot.lane.b32.xlu1 %v814_v42, %s1679_s2 }
 0x1d5   : > { %911 = vrot.lane.b32.xlu1 %v909_v43, %s1679_s2 }
 0x23d   : > { %v661_v46 = vpop.permute.xlu0 %660 }
 0x23e   : > { %v667_v47 = vsel %vm662_vm4, %v661_v46, 0 }
 0x23f   : > { %v620_v50 = vpop.permute.xlu1 %619  ;;  %1259 = vmatpush3.bf16.xpose.msra.mxu0 %v667_v47 }
 0x240   : > { %v622_v51 = vadd.f32 %v620_v50, %v612_v48  ;;  %1270 = vmatprep.subr.bf16.mxu0 %v1673_v2 }
 0x242   : > { %v717_v52 = vmul.f32 %v1445_v49, %v622_v51  ;;  %v656_v54 = vpack.c.bf16 %v622_v51, %v622_v51 }
 0x243   : > { %v817_v53 = vpop.permute.xlu1 %816 }
 0x244   : > { %v718_v55 = vpack.c.bf16 %v717_v52, %v717_v52  ;;  %819 = vxpose.xlu1.c.b16.start.end [1/1] (short) (narrow) %v817_v53, 16 }
 0x246   : > { %1261 = vmatmul.mubr.msk.bf16.vlgmr.msra.gmra.mxu0 %vm662_vm4, %v656_v54  ;;  %1267 = vmatmul.mubr.msk.bf16.vlgmr.msra.gmra.mxu1 %vm662_vm4, %v718_v55 }
 0x247   : > { %1272 = vmatprep.mubr.msk.bf16.mxu0 %vm1674_vm1, %v1673_v2  ;;  %1278 = vmatprep.mubr.msk.bf16.mxu1 %vm1674_vm1, %v1673_v2  ;;  %v912_v21 = vpop.permute.xlu1 %911 }
 0x248   : > { %1271 = vmatpush3.bf16.msra.mxu0 %v771_v57  ;;  %1277 = vmatpush3.bf16.msra.mxu1 %v771_v57 }
 0x249   : > { %1282 = vmatprep.subr.bf16.mxu0 %v1673_v2 }
 0x2a6   : > { %v827_v23 = vpop.trf.xlu1 }
 0x2a7   : > { %1279 = vmatmul.mubr.msk.bf16.vlgmr.msra.gmra.mxu1 %vm662_vm4, %v827_v23 }
 0x306   : > { %v703_v0 = vpop.f32.mrf.mxu0  ;;  %v761_v1 = vpop.f32.mrf.mxu1 }
 0x307   : > { %v710_v3 = vmul.f32 %v1445_v49, %v703_v0 }
 0x308   : > { %v1262_v4 = vpop.f32.mrf.mxu0  ;;  %v1268_v5 = vpop.f32.mrf.mxu1 }
 0x309   : > { %v711_v6 = vmul.f32 %v1447_v63, %v710_v3 }
 0x30a   : > { %v706_v7 = vpop.f32.mrf.mxu0  ;;  %v764_v8 = vpop.f32.mrf.mxu1 }
 0x30b   : > { %v712_v9 = vsel %vm709_vm5, %v711_v6, 0.0 }
 0x30c   : > { %v713_v10 = vpack.c.bf16 %v712_v9, %v712_v9  ;;  %v1263_v11 = vpop.f32.mrf.mxu0  ;;  %v1269_v12 = vpop.f32.mrf.mxu1 }
 0x30e   : > { %1273 = vmatmul.mubr.msk.bf16.vlgmr.msra.gmra.mxu0 %vm662_vm4, %v713_v10 }
 0x30f   : > { %1284 = vmatprep.mubr.msk.bf16.mxu0 %vm1674_vm1, %v1673_v2  ;;  %1283 = vmatpush3.bf16.msra.mxu0 %v1437_v22 }
 0x367   : > { %v872_v37 = vpop.f32.mrf.mxu1 }
 0x368   : > { %v883_v38 = vadd.f32 %v882_v35, %v872_v37 }
 0x369   : > { %v1280_v39 = vpop.f32.mrf.mxu1 }
 0x36a   : > { %885 = vst.msk [vmem:[%s1989_s1] sm:$0xff] %vm884_vm6, %v883_v38 }
 0x36b   : > { %v875_v40 = vpop.f32.mrf.mxu1 }
 0x36d   : > { %v1281_v41 = vpop.f32.mrf.mxu1 }
 0x3ce   : > { %v807_v13 = vpop.f32.mrf.mxu0 }
 0x3cf   : > { %v808_v14 = vadd.f32 %v807_v13, %v761_v1 }
 0x3d0   : > { %v1274_v15 = vpop.f32.mrf.mxu0 }
 0x3d1   : > { %v886_v16 = vmul.f32 %v808_v14, %v808_v14 }
 0x3d2   : > { %v810_v17 = vpop.f32.mrf.mxu0 }
 0x3d3   : > { %v887_v18 = vsel %vm884_vm6, %v886_v16, 0.0 }
 0x3d4   : > { %888 = vadd.xlane.f32.xlu0 %v887_v18  ;;  %v1275_v19 = vpop.f32.mrf.mxu0 }
 0x45d   : > { %v889_v24 = vpop.xlane.xlu0 %888 }
 0x45e   : > { %v891_v25 = vmul.f32 0.0625, %v889_v24 }
 0x460   : > { %v892_v2 = vadd.f32 1e-05, %v891_v25 }
 0x462   : > { %1448 = vrsqrt.f32 %v892_v2 }
 0x46f   : > { %v1449_v26 = vpop.eup %1448 }
 0x470   : > { %v894_v28 = vmul.f32 %v1449_v26, %v808_v14 }
 0x472   : > { %v902_v30 = vmul.f32 %v1212_v27, %v894_v28 }
 0x474   : > { %v914_v31 = vmul.f32 %v912_v21, %v902_v30 }
 0x476   : > { %v915_v32 = vpack.c.bf16 %v914_v31, %v914_v31 }
 0x478   : > { %1285 = vmatmul.mubr.msk.bf16.vlgmr.msra.gmra.mxu0 %vm884_vm6, %v915_v32 }
 0x538   : > { %v961_v42 = vpop.f32.mrf.mxu0 }
 0x53a   : > { %v1286_v43 = vpop.f32.mrf.mxu0  ;;  %970 = sbr.rel (%p1216_p4) target bundleno = 1344 (0x540), region = 72 }
 0x53c   : > { %v964_v44 = vpop.f32.mrf.mxu0 }
 0x53e   : > { %v1287_v45 = vpop.f32.mrf.mxu0 }
 0x53f   : > { %971 = vst.msk [vmem:[%s1951_s24] sm:$0xff] %vm510_vm2, %v961_v42 }
 0x540 PF: > { %p1217_p6 = scmp.le.s32.totalorder %s1641_s11, 0 }
 0x542   : > { %975 = sbr.rel (%p1217_p6) target bundleno = 1355 (0x54b), region = 76 }
 0x547   : > { %v976_v20 = vld [vmem:[%s1951_s24] sm:$0xff] }
 0x548   : > { %v977_v29 = vadd.f32 %v976_v20, %v961_v42 }
 0x54a   : > { %978 = vst.msk [vmem:[%s1951_s24] sm:$0xff] %vm510_vm2, %v977_v29 }
 0x54b PF: > { %s2178_s25 = sld [smem:[#allocation21_spill]]  ;;  %s1219_s17 = sshll.u32 %s1649_s13, 1 }
 0x54c   : > { %s991_s0 = sadd.s32 %s1645_s12, %s1219_s17  ;;  %s995_s16 = sshll.u32 %s1951_s24, 4  ;;  %s996_s16 = int_to_ptr.vmem [resolvable:$true] %s995_s16 }
 0x54d   : > { %s1220_s10 = sshll.u32 %s991_s0, 7  ;;  %s2179_s18 = sld [smem:[#allocation34_spill]] }
 0x54e   : > { %s2180_s20 = sand.u32 1, %s1621_s28   ;;  %s1521_s23 = scalar_lea.vmem %s996_s16, 128 }
 0x54f   : > { %s980_s27 = scalar_lea.sflag [#allocation5], %s2180_s20  ;;  %p1522_p10 = scmp.ne.s32.totalorder %s996_s16, %s1521_s23 }
 0x550   : > { %s1680_s3 = smov [#allocation10]  }
 0x551   : > { %p2181_p12 = scmp.ne.s32.totalorder %s2178_s25, 0  ;;  %s1525_s14 = sshll.u32 %s1680_s3, 4  ;;  %s1526_s14 = int_to_ptr.vmem [resolvable:$false] %s1525_s14 }
 0x552   : > { %s1527_s19 = scalar_lea.vmem %s1526_s14, 256  ;;  %p1528_p5 = scmp.lt.s32.totalorder %s996_s16, %s1526_s14 }
 0x553   : > { %s993_s22 = scalar_lea.hbm %s2179_s18, %s1220_s10  ;;  %p1523_p0 = pnand %p1522_p10, %p2181_p12 }
 0x554   : > { %p1529_p8 = scmp.lt.s32.totalorder %s1527_s19, %s1521_s23 }
 0x555   : > { %p1524_p2 = pneg %p1523_p0 }
 0x556   : > { %p1530_p9 = por %p1529_p8, %p1528_p5 }
 0x558   : > { %p1531_p1 = pnand %p1530_p9, %p1524_p2 }
 0x55a   : > { %1534 = shalt.err (!%p1531_p1)
}
 0x55b   : > { %s1535_s12 = scalar_lea.hbm %s993_s22, 128  ;;  %s1539_s8 = scalar_lea.hbm %s2179_s18, 512 }
 0x55c   : > { %p1536_p3 = scmp.ne.s32.totalorder %s993_s22, %s1535_s12  ;;  %p1540_p13 = scmp.lt.s32.totalorder %s993_s22, %s2179_s18 }
 0x55d   : > { %p1541_p4 = scmp.lt.s32.totalorder %s1539_s8, %s1535_s12 }
 0x55e   : > { %p1537_p7 = pnand %p1536_p3, %p2181_p12 }
 0x55f   : > { %p1542_p6 = por %p1541_p4, %p1540_p13 }
 0x560   : > { %p1538_p11 = pneg %p1537_p7 }
 0x562   : > { %p1543_p10 = pnand %p1542_p6, %p1538_p11 }
 0x564   : > { %1546 = shalt.err (!%p1543_p10)
}
 0x565   : > { %1296 = dma.vmem_to_hbm [thread:$0]  (%p2181_p12), %s996_s16, 128, %s993_s22, %s980_s27  }
 0x566 PF: > { %s2182_s1 = sld [smem:[#allocation20_spill]] }
 0x567   : > { %s2183_s2 = sld [smem:[#allocation15_spill]] }
 0x568   : > { %s2184_s26 = sld [smem:[#allocation22_spill]] }
 0x56c   : > { %p1316_p0 = scmp.ge.s32.totalorder %s2182_s1, 2 }
 0x56d   : > { %s1007_s30 = sand.u32 1, %s2183_s2  }
 0x56e   : > { %p2185_p2 = scmp.ne.s32.totalorder %s2184_s26, 0  ;;  %s1008_s6 = scalar_lea.sflag [#allocation5], %s1007_s30 }
 0x570   : > { %p1310_p5 = pnand %p1316_p0, %p2185_p2 }
 0x572   : > { %p1311_p8 = pneg %p1310_p5 }
 0x574   : > { %1612 = dma.done.wait (%p1311_p8), %s1008_s6, 128  }
 0x575   : > { %1614 = vsyncadd (%p1311_p8), %s1008_s6, 4294967168  ;;  %s28_s17 = sadd.s32 1, %s2182_s1   ;;  %s2187_s25 = sld [smem:[#allocation16_spill]] }
 0x576   : > { %p2065_p9 = scmp.ge.s32.totalorder %s28_s17, 18   ;;  %s2188_s10 = sld [smem:[#allocation25_spill]] }
 0x577   : > { %s2189_s11 = sld [smem:[#allocation17_spill]]  ;;  %s2195_s27 = smov %s1621_s28 }
 0x578   : > { %s2190_s12 = sld [smem:[#allocation18_spill]]  ;;  %s2196_s28 = smov %s1625_s29 }
 0x579   : > { %s2191_s13 = sld [smem:[#allocation19_spill]]  ;;  %s2197_s29 = smov %s1892_s7 }
 0x57a   : > { %s2192_s14 = sld [smem:[#allocation23_spill]]  ;;  %s2198_s30 = smov %s1633_s9 }
 0x57b   : > { %s2193_s15 = sld [smem:[#allocation24_spill]]  ;;  %s2199_s9 = smov %s2187_s25 }
 0x57c   : > { %s2194_s16 = sld [smem:[#allocation26_spill]]  ;;  %27 = sbr.rel (!%p2065_p9) target bundleno = 22 (0x16), region = 141 }
 0x581   :  { %1013 = vsyncpa [#allocation4], 1 }
 0x582   :  { %1015 = vsyncpa [#allocation4 + $0x1], 1 }
 0x583   :  { %1016 = vsyncpa [#allocation9], 1 }
 0x584   :  { %1018 = vsyncpa [#allocation9 + $0x1], 1 }
 0x585   :  { %1019 = vsyncpa [#allocation5], 1 }
 0x586   :  { %1021 = vsyncpa [#allocation5 + $0x1], 1 }
 0x587   :  { %1022 = vsyncpa [#allocation6], 1 }
 0x588   :  { %1024 = vsyncpa [#allocation6 + $0x1], 1 }

</bundles_post_ra>
